<compile_context>
chip_gen: v7x
topology: tpu7x:2x2x1
jax: 0.10.0
libtpu: 0.0.40
codegen_flags: <defaults>
</compile_context>

<pallas_src>
import jax
import jax.numpy as jnp
from jax.experimental import pallas as pl
from jax.experimental.pallas import tpu as pltpu

LANE = 128


def _round_up(x, m):
    return (x + m - 1) // m * m


def elm_kernel(x_ref, alpha_ref, bias_ref, beta_ref, out_ref):
    # First matmul on the MXU: bf16 inputs, f32 accumulation.
    pre = jnp.dot(x_ref[...], alpha_ref[...], preferred_element_type=jnp.float32)
    pre = pre + bias_ref[...]                      # broadcast (1, Hp) over rows, f32
    # Sigmoid: exp on the EUP; approx reciprocal also on the EUP (~free slot).
    e = jnp.exp(-pre)
    h = pl.reciprocal(1.0 + e, approx=True)
    # Second matmul on the MXU (bf16 inputs, f32 accumulation).
    out = jnp.dot(h.astype(jnp.bfloat16), beta_ref[...],
                  preferred_element_type=jnp.float32)
    out_ref[...] = out.astype(out_ref.dtype)


def elm_forward(x, alpha, bias, beta):
    input_size, h_size = alpha.shape
    num_classes = beta.shape[1]
    out_dtype = x.dtype

    # Matches torch's `out.view(-1, num_classes)` for any leading batch shape.
    x2 = x.reshape(-1, input_size)
    B = x2.shape[0]

    # Lane-dense padded sizes, and a batch tile sized for the MXU M dimension.
    Kp = _round_up(input_size, LANE)
    Hp = _round_up(h_size, LANE)
    Np = _round_up(num_classes, LANE)
    block_m = 128 if B >= 128 else _round_up(B, 8)
    Bp = _round_up(B, block_m)

    # Zero-pad operands (done once, outside the kernel).  Padded hidden units
    # see pre-activation 0 -> sigmoid 0.5, but their beta rows are zero, so the
    # final output is unchanged.
    xb = jnp.pad(x2.astype(jnp.bfloat16), ((0, Bp - B), (0, Kp - input_size)))
    alphab = jnp.pad(alpha.astype(jnp.bfloat16),
                     ((0, Kp - input_size), (0, Hp - h_size)))
    betab = jnp.pad(beta.astype(jnp.bfloat16),
                    ((0, Hp - h_size), (0, Np - num_classes)))
    bias2d = jnp.pad(bias.astype(jnp.float32).reshape(1, h_size),
                     ((0, 0), (0, Hp - h_size)))

    grid = (Bp // block_m,)

    flops = 2 * Bp * (Kp * Hp + Hp * Np)
    bytes_accessed = (
        xb.size * 2 + alphab.size * 2 + betab.size * 2 + bias2d.size * 4
        + Bp * Np * jnp.dtype(out_dtype).itemsize
    )

    out_padded = pl.pallas_call(
        elm_kernel,
        out_shape=jax.ShapeDtypeStruct((Bp, Np), out_dtype),
        grid=grid,
        in_specs=[
            # x streams over the batch grid axis.
            pl.BlockSpec((block_m, Kp), lambda i: (i, 0)),
            # Weights / bias stay VMEM-resident across grid steps.
            pl.BlockSpec((Kp, Hp), lambda i: (0, 0)),
            pl.BlockSpec((1, Hp), lambda i: (0, 0)),
            pl.BlockSpec((Hp, Np), lambda i: (0, 0)),
        ],
        out_specs=pl.BlockSpec((block_m, Np), lambda i: (i, 0)),
        compiler_params=pltpu.CompilerParams(
            dimension_semantics=("parallel",)),
        cost_estimate=pl.CostEstimate(
            flops=flops,
            transcendentals=Bp * Hp,
            bytes_accessed=bytes_accessed),
    )(xb, alphab, bias2d, betab)

    # Slice off batch / class padding.
    return out_padded[:B, :num_classes]


if __name__ == "__main__":
    # Shapes implied by the module: x (batch, input_size); forward flattens to
    # (-1, num_classes), a no-op for 2-D input.
    batch = 8
    input_size = 32
    h_size = 64
    num_classes = 16

    key = jax.random.PRNGKey(0)
    kx, ka, kb = jax.random.split(key, 3)

    x = jax.random.normal(kx, (batch, input_size), dtype=jnp.float32)
    # Parameter init matching __init__: uniform(-1, 1) for alpha/beta, zero bias.
    alpha = jax.random.uniform(ka, (input_size, h_size), dtype=jnp.float32,
                               minval=-1.0, maxval=1.0)
    beta = jax.random.uniform(kb, (h_size, num_classes), dtype=jnp.float32,
                              minval=-1.0, maxval=1.0)
    bias = jnp.zeros((h_size,), dtype=jnp.float32)

    out = jax.jit(elm_forward)(x, alpha, bias, beta)
    out = jax.block_until_ready(out)
    assert out.shape == (batch, num_classes)

    # Reference matching the kernel's precision choices (bf16 MXU inputs,
    # f32 accumulation, exact sigmoid).
    pre_ref = jnp.dot(x.astype(jnp.bfloat16), alpha.astype(jnp.bfloat16),
                      preferred_element_type=jnp.float32) + bias
    h_ref = jax.nn.sigmoid(pre_ref)
    out_ref = jnp.dot(h_ref.astype(jnp.bfloat16), beta.astype(jnp.bfloat16),
                      preferred_element_type=jnp.float32).reshape(-1, num_classes)
    assert jnp.allclose(out, out_ref, atol=2e-2, rtol=2e-2), \
        float(jnp.max(jnp.abs(out - out_ref)))

    # Sanity check against the pure-f32 PyTorch-equivalent math (loose tolerance
    # to cover bf16 matmul inputs).
    out_f32 = (jax.nn.sigmoid(x @ alpha + bias) @ beta).reshape(-1, num_classes)
    assert jnp.allclose(out, out_f32, atol=1.5e-1, rtol=1.5e-1), \
        float(jnp.max(jnp.abs(out - out_f32)))

    print("KERNEL_OK")
</pallas_src>

<mosaic_0001>
module attributes {stable_mosaic.version = 11 : i64} {
  func.func @elm_kernel(%arg0: i32, %arg1: memref<8x128xbf16, #tpu.memory_space<vmem>>, %arg2: memref<128x128xbf16, #tpu.memory_space<vmem>>, %arg3: memref<1x128xf32, #tpu.memory_space<vmem>>, %arg4: memref<128x128xbf16, #tpu.memory_space<vmem>>, %arg5: memref<8x128xf32, #tpu.memory_space<vmem>>) attributes {dimension_semantics = [#tpu.dimension_semantics<parallel>], iteration_bounds = array<i64: 1>, scalar_prefetch = 0 : i64, scratch_operands = 0 : i64, tpu.core_type = #tpu.core_type<tc>, window_params = [{transform_indices = @transform_0, window_bounds = array<i64: 8, 128>}, {pipeline_mode = #tpu.pipeline_mode<synchronous>, transform_indices = @transform_1, window_bounds = array<i64: 128, 128>}, {pipeline_mode = #tpu.pipeline_mode<synchronous>, transform_indices = @transform_2, window_bounds = array<i64: 1, 128>}, {pipeline_mode = #tpu.pipeline_mode<synchronous>, transform_indices = @transform_3, window_bounds = array<i64: 128, 128>}, {transform_indices = @transform_4, window_bounds = array<i64: 8, 128>}]} {
    %c0 = arith.constant 0 : index
    %c0_0 = arith.constant 0 : index
    %0 = vector.load %arg1[%c0, %c0_0] : memref<8x128xbf16, #tpu.memory_space<vmem>>, vector<8x128xbf16>
    %c0_1 = arith.constant 0 : index
    %c0_2 = arith.constant 0 : index
    %1 = vector.load %arg2[%c0_1, %c0_2] : memref<128x128xbf16, #tpu.memory_space<vmem>>, vector<128x128xbf16>
    %cst = arith.constant dense<0.000000e+00> : vector<8x128xf32>
    %2 = tpu.matmul %0, %1, %cst {dimension_numbers = #tpu.dot_dimension_numbers<[1], [0], [0], [1], [0, 0, 1, 1], [], []>} : vector<8x128xbf16>, vector<128x128xbf16>, vector<8x128xf32> -> vector<8x128xf32>
    %c0_3 = arith.constant 0 : index
    %c0_4 = arith.constant 0 : index
    %3 = vector.load %arg3[%c0_3, %c0_4] : memref<1x128xf32, #tpu.memory_space<vmem>>, vector<1x128xf32>
    %4 = vector.broadcast %3 : vector<1x128xf32> to vector<8x128xf32>
    %5 = arith.addf %2, %4 : vector<8x128xf32>
    %cst_5 = arith.constant 0.000000e+00 : f32
    %6 = vector.broadcast %cst_5 : f32 to vector<8x128xf32>
    %7 = arith.subf %6, %5 : vector<8x128xf32>
    %8 = math.exp %7 : vector<8x128xf32>
    %cst_6 = arith.constant 1.000000e+00 : f32
    %9 = vector.broadcast %cst_6 : f32 to vector<8x128xf32>
    %10 = arith.addf %9, %8 : vector<8x128xf32>
    %11 = tpu.reciprocal %10 {approx = true} : vector<8x128xf32> -> vector<8x128xf32>
    %12 = arith.truncf %11 : vector<8x128xf32> to vector<8x128xbf16>
    %c0_7 = arith.constant 0 : index
    %c0_8 = arith.constant 0 : index
    %13 = vector.load %arg4[%c0_7, %c0_8] : memref<128x128xbf16, #tpu.memory_space<vmem>>, vector<128x128xbf16>
    %cst_9 = arith.constant dense<0.000000e+00> : vector<8x128xf32>
    %14 = tpu.matmul %12, %13, %cst_9 {dimension_numbers = #tpu.dot_dimension_numbers<[1], [0], [0], [1], [0, 0, 1, 1], [], []>} : vector<8x128xbf16>, vector<128x128xbf16>, vector<8x128xf32> -> vector<8x128xf32>
    %c0_10 = arith.constant 0 : index
    %c0_11 = arith.constant 0 : index
    %15 = vector.load %arg5[%c0_10, %c0_11] : memref<8x128xf32, #tpu.memory_space<vmem>>, vector<8x128xf32>
    tpu.vector_store %arg5[%c0_10, %c0_11], %14 {strides = array<i32>} : memref<8x128xf32, #tpu.memory_space<vmem>>, vector<8x128xf32>,
    return
  }
  func.func @transform_0(%arg0: i32) -> (i32, i32) {
    %c0_i32 = arith.constant 0 : i32
    %c0_i32_0 = arith.constant 0 : i32
    return %arg0, %c0_i32 : i32, i32
  }
  func.func @transform_1(%arg0: i32) -> (i32, i32) {
    %c0_i32 = arith.constant 0 : i32
    %c0_i32_0 = arith.constant 0 : i32
    %c0_i32_1 = arith.constant 0 : i32
    return %c0_i32, %c0_i32_0 : i32, i32
  }
  func.func @transform_2(%arg0: i32) -> (i32, i32) {
    %c0_i32 = arith.constant 0 : i32
    %c0_i32_0 = arith.constant 0 : i32
    %c0_i32_1 = arith.constant 0 : i32
    return %c0_i32, %c0_i32_0 : i32, i32
  }
  func.func @transform_3(%arg0: i32) -> (i32, i32) {
    %c0_i32 = arith.constant 0 : i32
    %c0_i32_0 = arith.constant 0 : i32
    %c0_i32_1 = arith.constant 0 : i32
    return %c0_i32, %c0_i32_0 : i32, i32
  }
  func.func @transform_4(%arg0: i32) -> (i32, i32) {
    %c0_i32 = arith.constant 0 : i32
    %c0_i32_0 = arith.constant 0 : i32
    return %arg0, %c0_i32 : i32, i32
  }
}

</mosaic_0001>

<bundles_post_ra>
// kernel: elm_forward.1
= control target key start
LH: loop header
LB: loop body
LE: loop exit
PB: predicated region body
PF: predicated region fallthrough
CT: control target
= control target key end

     0   :  { %v378_v1 = vmov 0.0   ;;  %vm379_vm0 = vmmov 0   ;;  %s472_s0 = inlined_call_operand.vmem [shape: bf16[8,128], index: 0, kind: input, shape index: {}]   ;;  %s473_s1 = inlined_call_operand.vmem [shape: bf16[128,128], index: 1, kind: input, shape index: {}]   ;;  %s474_s2 = inlined_call_operand.vmem [shape: f32[1,128], index: 2, kind: input, shape index: {}]   ;;  %s475_s3 = inlined_call_operand.vmem [shape: bf16[128,128], index: 3, kind: input, shape index: {}]   ;;  %s476_s4 = inlined_call_operand.hbm [shape: f32[8,128], index: 4, kind: output, shape index: {}]  }
   0x1   :  { %v334_v0 = vld [vmem:[%s473_s1] sm:$0xff]   ;;  %291 = vmatprep.subr.bf16.mxu0 %v378_v1  ;;  %311 = vmatprep.subr.bf16.mxu1 %v378_v1  ;;  %v335_v2 = vld [vmem:[%s473_s1 + $0x8] sm:$0xff]   ;;  %v336_v3 = vld [vmem:[%s473_s1 + $0x10] sm:$0xff]  }
   0x2   :  { %292 = vmatpush3.bf16.msra.mxu0 %v334_v0  ;;  %307 = vmatprep.mubr.msk.bf16.mxu0 %vm379_vm0, %v378_v1  ;;  %v337_v4 = vld [vmem:[%s473_s1 + $0x18] sm:$0xff]   ;;  %v338_v5 = vld [vmem:[%s473_s1 + $0x20] sm:$0xff]  }
   0x3   :  { %293 = vmatprep.subr.bf16.mxu0 %v378_v1  ;;  %327 = vmatprep.mubr.msk.bf16.mxu1 %vm379_vm0, %v378_v1 }
   0x6   :  { %294 = vmatpush3.bf16.msra.mxu0 %v335_v2 }
   0x7   :  { %295 = vmatprep.subr.bf16.mxu0 %v378_v1 }
   0xa   :  { %296 = vmatpush3.bf16.msra.mxu0 %v336_v3 }
   0xb   :  { %297 = vmatprep.subr.bf16.mxu0 %v378_v1 }
   0xe   :  { %298 = vmatpush3.bf16.msra.mxu0 %v337_v4 }
   0xf   :  { %9 = vsyncpa [#allocation3], 0  ;;  %299 = vmatprep.subr.bf16.mxu0 %v378_v1  ;;  %v339_v6 = vld [vmem:[%s473_s1 + $0x28] sm:$0xff]   ;;  %v340_v7 = vld [vmem:[%s473_s1 + $0x30] sm:$0xff]  }
  0x10   :  { %v341_v8 = vld [vmem:[%s473_s1 + $0x38] sm:$0xff]   ;;  %v19_v9 = vld [vmem:[%s472_s0] sm:$0xf]  ;;  %v343_v11 = vld [vmem:[%s475_s3 + $0x8] sm:$0xff]  }
  0x11   :  { %v342_v10 = vld [vmem:[%s475_s3] sm:$0xff]   ;;  %v344_v12 = vld [vmem:[%s475_s3 + $0x10] sm:$0xff]   ;;  %v345_v13 = vld [vmem:[%s475_s3 + $0x18] sm:$0xff]  }
  0x12   :  { %300 = vmatpush3.bf16.msra.mxu0 %v338_v5  ;;  %312 = vmatpush3.bf16.msra.mxu1 %v342_v10  ;;  %v346_v14 = vld [vmem:[%s475_s3 + $0x20] sm:$0xff]   ;;  %v347_v15 = vld [vmem:[%s475_s3 + $0x28] sm:$0xff]   ;;  %v348_v16 = vld [vmem:[%s475_s3 + $0x30] sm:$0xff]  }
  0x13   :  { %301 = vmatprep.subr.bf16.mxu0 %v378_v1  ;;  %313 = vmatprep.subr.bf16.mxu1 %v378_v1  ;;  %v349_v17 = vld [vmem:[%s475_s3 + $0x38] sm:$0xff]   ;;  %v256_v18 = vld [vmem:[%s474_s2] ss:$0 sm:$0xff]  ;;  %s380_s3 = smov [#allocation2]  }
  0x14   :  { %s248_s23 = sshll.u32 %s380_s3, 4  ;;  %s249_s23 = int_to_ptr.vmem [resolvable:$true] %s248_s23 }
  0x15   :  { %s354_s2 = scalar_lea.vmem %s249_s23, 128  ;;  %p359_p1 = scmp.lt.s32.totalorder %s249_s23, %s249_s23 }
  0x16   :  { %302 = vmatpush3.bf16.msra.mxu0 %v339_v6  ;;  %314 = vmatpush3.bf16.msra.mxu1 %v343_v11  ;;  %p355_p0 = scmp.ne.s32.totalorder %s249_s23, %s354_s2  ;;  %p360_p2 = scmp.lt.s32.totalorder %s354_s2, %s354_s2 }
  0x17   :  { %303 = vmatprep.subr.bf16.mxu0 %v378_v1  ;;  %315 = vmatprep.subr.bf16.mxu1 %v378_v1 }
  0x18   :  { %p361_p3 = por %p360_p2, %p359_p1 }
  0x1a   :  { %304 = vmatpush3.bf16.msra.mxu0 %v340_v7  ;;  %316 = vmatpush3.bf16.msra.mxu1 %v344_v12  ;;  %p362_p4 = pnand %p361_p3, %p355_p0 }
  0x1b   :  { %305 = vmatprep.subr.bf16.mxu0 %v378_v1  ;;  %317 = vmatprep.subr.bf16.mxu1 %v378_v1 }
  0x1e   :  { %306 = vmatpush3.bf16.msra.mxu0 %v341_v8  ;;  %318 = vmatpush3.bf16.msra.mxu1 %v345_v13 }
  0x1f   :  { %319 = vmatprep.subr.bf16.mxu1 %v378_v1 }
  0x21   :  { %308 = vmatmul.mubr.bf16.vlgmr.msra.gmra.mrb[0].mxu0 %v19_v9 }
  0x22   :  { %320 = vmatpush3.bf16.msra.mxu1 %v346_v14 }
  0x23   :  { %321 = vmatprep.subr.bf16.mxu1 %v378_v1 }
  0x26   :  { %322 = vmatpush3.bf16.msra.mxu1 %v347_v15 }
  0x27   :  { %323 = vmatprep.subr.bf16.mxu1 %v378_v1 }
  0x2a   :  { %324 = vmatpush3.bf16.msra.mxu1 %v348_v16 }
  0x2b   :  { %325 = vmatprep.subr.bf16.mxu1 %v378_v1 }
  0x2e   :  { %326 = vmatpush3.bf16.msra.mxu1 %v349_v17 }
  0xf4   :  { %v125_v19 = vpop.f32.mrb[0].mxu0 }
  0xf5   :  { %v126_v20 = vadd.f32 %v256_v18, %v125_v19  ;;  %v309_v21 = vpop.f32.mrb[1].mxu0 }
  0xf6   :  { %v128_v22 = vpop.f32.mrb[2].mxu0 }
  0xf7   :  { %v131_v23 = vsub.f32 0.0, %v126_v20  ;;  %v310_v24 = vpop.f32.mrb[3].mxu0 }
  0xf9   :  { %v132_v25 = vmul.f32 1.442695, %v131_v23 }
  0xfb   :  { %350 = vpow2.f32 %v132_v25 }
 0x105   :  { %v351_v26 = vpop.eup %350 }
 0x106   :  { %v134_v27 = vadd.f32 1.0, %v351_v26 }
 0x108   :  { %352 = vrcp.f32 %v134_v27 }
 0x112   :  { %v353_v28 = vpop.eup %352 }
 0x113   :  { %v136_v29 = vpack.c.bf16 %v353_v28, %v353_v28 }
 0x115   :  { %328 = vmatmul.mubr.bf16.vlgmr.msra.gmra.mrb[0].mxu1 %v136_v29 }
 0x1e8   :  { %v235_v30 = vpop.f32.mrb[0].mxu1 }
 0x1e9   :  { %241 = vst [vmem:[#allocation2] sm:$0xff] %v235_v30  ;;  %v329_v31 = vpop.f32.mrb[1].mxu1 }
 0x1ea   :  { %v238_v32 = vpop.f32.mrb[2].mxu1 }
 0x1eb   :  { %365 = shalt.err (!%p362_p4)
}
 0x1ec   :  { %s366_s26 = scalar_lea.hbm %s476_s4, 128 }
 0x1ed   :  { %p367_p5 = scmp.ne.s32.totalorder %s476_s4, %s366_s26  ;;  %p370_p6 = scmp.lt.u32.totalorder %s366_s26, %s476_s4 }
 0x1ef   :  { %p372_p7 = pnand %p370_p6, %p367_p5 }
 0x1f1   :  { %375 = shalt.err (!%p372_p7)
}
 0x1f2   :  { %251 = dma.vmem_to_hbm [thread:$0]  %s249_s23, 128, %s476_s4, [#allocation3]   ;;  %v330_v33 = vpop.f32.mrb[3].mxu1 }
 0x1f3   :  { %376 = dma.done.wait [#allocation3], 128  }
 0x1f4   :  { %377 = vsyncadd [#allocation3], 4294967168 }
 0x1f5   :  { %255 = vsyncpa [#allocation3], 1 }

</bundles_post_ra>
